<compile_context>
chip_gen: v7x
topology: tpu7x:2x2x1
jax: 0.10.0
libtpu: 0.0.40
codegen_flags: <defaults>
</compile_context>

<pallas_src>
import jax
import jax.numpy as jnp
from jax.experimental import pallas as pl
from jax.experimental.pallas import tpu as pltpu


def _make_ce_kernel(n_rows: int, tile_n: int, ignore_index: int):
    """Kernel factory: per-tile partial sum of masked per-row NLL."""

    def kernel(logits_ref, y_ref, psum_ref):
        # logits_ref: (TILE_N, V) in native dtype; y_ref: (TILE_N, 1) int32
        # psum_ref:   (1, 1, 1) f32  -- partial sum of valid-row NLL for this tile
        x = logits_ref[...].astype(jnp.float32)                      # (TILE_N, V)
        m = jnp.max(x, axis=-1, keepdims=True)                       # (TILE_N, 1)
        s = x - m                                                    # (TILE_N, V)
        lse = jnp.log(jnp.sum(jnp.exp(s), axis=-1, keepdims=True))   # (TILE_N, 1)

        tgt = y_ref[...]                                             # (TILE_N, 1)
        # (1, V) iota; broadcasting happens inside the compare (no full-tile iota).
        col = jax.lax.broadcasted_iota(jnp.int32, (1, x.shape[1]), 1)
        picked_s = jnp.sum(jnp.where(col == tgt, s, 0.0),
                           axis=-1, keepdims=True)                   # (TILE_N, 1)
        # -log_softmax(x)[tgt] = log(sum exp(x - m)) - (x[tgt] - m)
        nll = lse - picked_s                                         # (TILE_N, 1)

        # Mask the ragged last tile (rows >= n_rows read unspecified data) and
        # ignore_index targets. Everything here is row-local, so garbage in the
        # out-of-bounds rows cannot contaminate valid rows.
        row0 = pl.program_id(0) * tile_n
        row_ids = row0 + jax.lax.broadcasted_iota(jnp.int32, (tile_n, 1), 0)
        valid = (row_ids < n_rows) & (tgt != ignore_index)

        tile_sum = jnp.sum(jnp.where(valid, nll, 0.0),
                           axis=0, keepdims=True)                    # (1, 1)
        psum_ref[0] = tile_sum

    return kernel


def _vmem_plan():
    """(vmem_limit_bytes, kernel working-set budget) for the current TPU gen."""
    try:
        cap = int(pltpu.get_tpu_info().vmem_capacity_bytes)
    except Exception:
        cap = 64 * 1024 * 1024          # be conservative (v7x-sized VMEM per TC)
    # Leave headroom for Mosaic internal scratch, y / output buffers, etc.
    vmem_limit = min(cap - 16 * 1024 * 1024, 112 * 1024 * 1024)
    vmem_limit = max(vmem_limit, 32 * 1024 * 1024)
    kernel_budget = (vmem_limit * 3) // 4
    return vmem_limit, kernel_budget


def _choose_tile_n(n_rows: int, vocab: int, itemsize: int, kernel_budget: int) -> int:
    """Row-tile size: as large as the f32 working set allows, multiple of 8,
    capped at 1024 (>=512-row tiles already sit near the HBM roofline), and
    guaranteed to give >= 2 grid steps for pipelining / v7x megacore sharding."""
    # Per-row working set: 2x double-buffered input block (native dtype) plus
    # ~4 full-tile f32 temporaries (upcast, shifted, exp, select) in the body.
    bytes_per_row = vocab * (2 * itemsize + 4 * 4)
    t = kernel_budget // max(bytes_per_row, 1)
    t = max(8, min(int(t), 1024))
    t = (t // 8) * 8
    while t > 8 and pl.cdiv(n_rows, t) < 2:
        t = max(8, ((t // 2) // 8) * 8)
    return t


def next_character_loss(logits: jax.Array, y: jax.Array, vocab_size: int,
                        ignore_index: int = -100) -> jax.Array:
    """Equivalent of NextCharacterLoss.forward(logits, y, vocab_size)."""
    logits2d = logits.reshape(-1, vocab_size)          # (N, V), any float dtype
    y1d = y.reshape(-1).astype(jnp.int32)               # (N,)
    n_rows, v = logits2d.shape
    itemsize = jnp.dtype(logits2d.dtype).itemsize
    # Non-multiple-of-128 vocab sizes are handled by Mosaic's masked lane layout;
    # performance is best when v % 128 == 0.

    vmem_limit, kernel_budget = _vmem_plan()
    tile_n = _choose_tile_n(n_rows, v, itemsize, kernel_budget)
    num_tiles = pl.cdiv(n_rows, tile_n)

    y2d = y1d.reshape(-1, 1)                             # (N, 1) — no padding needed

    partial_sums = pl.pallas_call(
        _make_ce_kernel(n_rows, tile_n, ignore_index),
        out_shape=jax.ShapeDtypeStruct((num_tiles, 1, 1), jnp.float32),
        grid_spec=pltpu.PrefetchScalarGridSpec(
            num_scalar_prefetch=0,
            grid=(num_tiles,),
            in_specs=[
                pl.BlockSpec((tile_n, v), lambda i: (i, 0)),
                pl.BlockSpec((tile_n, 1), lambda i: (i, 0)),
            ],
            out_specs=pl.BlockSpec((1, 1, 1), lambda i: (i, 0, 0)),
        ),
        compiler_params=pltpu.CompilerParams(
            dimension_semantics=("parallel",),
            vmem_limit_bytes=int(vmem_limit),
        ),
        cost_estimate=pl.CostEstimate(
            flops=6 * n_rows * v,
            transcendentals=n_rows * v,
            bytes_accessed=n_rows * v * itemsize + n_rows * 4 + num_tiles * 4,
        ),
    )(logits2d, y2d)

    # Valid-row count from y directly (N ints — cheap). No clamp: 0/0 -> NaN,
    # matching torch.nn.functional.cross_entropy when every target is ignored.
    n_valid = jnp.sum((y1d != ignore_index).astype(jnp.float32))
    loss = jnp.sum(partial_sums) / n_valid
    return loss.astype(jnp.float32)


if __name__ == "__main__":
    # Small deterministic example: batch=2, seq=8, vocab=128
    batch, seq, vocab = 2, 8, 128
    key = jax.random.PRNGKey(0)
    k_logits, k_y = jax.random.split(key)

    logits = jax.random.normal(k_logits, (batch, seq, vocab), dtype=jnp.float32)
    y = jax.random.randint(k_y, (batch, seq), 0, vocab, dtype=jnp.int32)

    loss = next_character_loss(logits, y, vocab)
    jax.block_until_ready(loss)

    # pure-JAX reference check
    lp = jax.nn.log_softmax(logits.reshape(-1, vocab).astype(jnp.float32), axis=-1)
    ref = -jnp.mean(jnp.take_along_axis(lp, y.reshape(-1, 1), axis=-1))
    assert jnp.allclose(loss, ref, rtol=1e-5, atol=1e-5), (loss, ref)

    print("KERNEL_OK")
</pallas_src>

<mosaic_0001>
module attributes {stable_mosaic.version = 11 : i64} {
  func.func @kernel(%arg0: i32, %arg1: memref<8x128xf32, #tpu.memory_space<vmem>>, %arg2: memref<8x1xi32, #tpu.memory_space<vmem>>, %arg3: memref<1x1x1xf32, #tpu.memory_space<vmem>>) attributes {dimension_semantics = [#tpu.dimension_semantics<parallel>], iteration_bounds = array<i64: 2>, scalar_prefetch = 0 : i64, scratch_operands = 0 : i64, tpu.core_type = #tpu.core_type<tc>, window_params = [{transform_indices = @transform_0, window_bounds = array<i64: 8, 128>}, {transform_indices = @transform_1, window_bounds = array<i64: 8, 1>}, {transform_indices = @transform_2, window_bounds = array<i64: 1, 1, 1>}]} {
    %c0 = arith.constant 0 : index
    %c0_0 = arith.constant 0 : index
    %0 = vector.load %arg1[%c0, %c0_0] : memref<8x128xf32, #tpu.memory_space<vmem>>, vector<8x128xf32>
    %cst = arith.constant dense<0xFF800000> : vector<8xf32>
    %1 = vector.multi_reduction <maximumf>, %0, %cst [1] : vector<8x128xf32> to vector<8xf32>
    %2 = vector.shape_cast %1 : vector<8xf32> to vector<8x1xf32>
    %3 = vector.broadcast %2 : vector<8x1xf32> to vector<8x128xf32>
    %4 = arith.subf %0, %3 : vector<8x128xf32>
    %5 = math.exp %4 : vector<8x128xf32>
    %cst_1 = arith.constant dense<0.000000e+00> : vector<8xf32>
    %6 = vector.multi_reduction <add>, %5, %cst_1 [1] : vector<8x128xf32> to vector<8xf32>
    %7 = vector.shape_cast %6 : vector<8xf32> to vector<8x1xf32>
    %8 = math.log %7 : vector<8x1xf32>
    %c0_2 = arith.constant 0 : index
    %c0_3 = arith.constant 0 : index
    %9 = vector.load %arg2[%c0_2, %c0_3] : memref<8x1xi32, #tpu.memory_space<vmem>>, vector<8x1xi32>
    %10 = tpu.iota {dimensions = array<i32: 1>} : vector<1x128xi32>
    %11 = vector.broadcast %10 : vector<1x128xi32> to vector<8x128xi32>
    %12 = vector.broadcast %9 : vector<8x1xi32> to vector<8x128xi32>
    %13 = arith.cmpi eq, %11, %12 : vector<8x128xi32>
    %cst_4 = arith.constant 0.000000e+00 : f32
    %14 = vector.broadcast %cst_4 : f32 to vector<8x128xf32>
    %15 = arith.select %13, %4, %14 : vector<8x128xi1>, vector<8x128xf32>
    %cst_5 = arith.constant dense<0.000000e+00> : vector<8xf32>
    %16 = vector.multi_reduction <add>, %15, %cst_5 [1] : vector<8x128xf32> to vector<8xf32>
    %17 = vector.shape_cast %16 : vector<8xf32> to vector<8x1xf32>
    %18 = arith.subf %8, %17 : vector<8x1xf32>
    %c8_i32 = arith.constant 8 : i32
    %19 = arith.muli %arg0, %c8_i32 : i32
    %20 = tpu.iota {dimensions = array<i32: 0>} : vector<8x1xi32>
    %21 = vector.broadcast %19 : i32 to vector<8x1xi32>
    %22 = arith.addi %21, %20 : vector<8x1xi32>
    %c16_i32 = arith.constant 16 : i32
    %23 = vector.broadcast %c16_i32 : i32 to vector<8x1xi32>
    %24 = arith.cmpi slt, %22, %23 : vector<8x1xi32>
    %c-100_i32 = arith.constant -100 : i32
    %25 = vector.broadcast %c-100_i32 : i32 to vector<8x1xi32>
    %26 = arith.cmpi ne, %9, %25 : vector<8x1xi32>
    %27 = arith.andi %24, %26 : vector<8x1xi1>
    %cst_6 = arith.constant 0.000000e+00 : f32
    %28 = vector.broadcast %cst_6 : f32 to vector<8x1xf32>
    %29 = arith.select %27, %18, %28 : vector<8x1xi1>, vector<8x1xf32>
    %cst_7 = arith.constant dense<0.000000e+00> : vector<1xf32>
    %30 = vector.multi_reduction <add>, %29, %cst_7 [0] : vector<8x1xf32> to vector<1xf32>
    %31 = vector.shape_cast %30 : vector<1xf32> to vector<1x1xf32>
    %c0_8 = arith.constant 0 : index
    %c0_9 = arith.constant 0 : index
    %c0_10 = arith.constant 0 : index
    %32 = vector.load %arg3[%c0_8, %c0_9, %c0_10] : memref<1x1x1xf32, #tpu.memory_space<vmem>>, vector<1x1x1xf32>
    %33 = vector.shape_cast %32 : vector<1x1x1xf32> to vector<1x1xf32>
    %34 = vector.shape_cast %31 : vector<1x1xf32> to vector<1x1x1xf32>
    tpu.vector_store %arg3[%c0_8, %c0_9, %c0_10], %34 {strides = array<i32>} : memref<1x1x1xf32, #tpu.memory_space<vmem>>, vector<1x1x1xf32>,
    return
  }
  func.func @transform_0(%arg0: i32) -> (i32, i32) {
    %c0_i32 = arith.constant 0 : i32
    %c0_i32_0 = arith.constant 0 : i32
    return %arg0, %c0_i32 : i32, i32
  }
  func.func @transform_1(%arg0: i32) -> (i32, i32) {
    %c0_i32 = arith.constant 0 : i32
    %c0_i32_0 = arith.constant 0 : i32
    return %arg0, %c0_i32 : i32, i32
  }
  func.func @transform_2(%arg0: i32) -> (i32, i32, i32) {
    %c0_i32 = arith.constant 0 : i32
    %c0_i32_0 = arith.constant 0 : i32
    %c0_i32_1 = arith.constant 0 : i32
    return %arg0, %c0_i32, %c0_i32_0 : i32, i32, i32
  }
}

</mosaic_0001>

<bundles_post_ra>
// kernel: tpu_custom_call.1
= control target key start
LH: loop header
LB: loop body
LE: loop exit
PB: predicated region body
PF: predicated region fallthrough
CT: control target
= control target key end

     0   :  { %s301_s9 = smov 0   ;;  %s330_s0 = inlined_call_operand.vmem [shape: f32[16,128], index: 0, kind: input, shape index: {}]   ;;  %s331_s1 = inlined_call_operand.vmem [shape: s32[16,1], index: 1, kind: input, shape index: {}]   ;;  %s332_s2 = inlined_call_operand.vmem [shape: f32[2,1,1], index: 2, kind: output, shape index: {}]  }
   0x1 LB: > { %s307_s10 = sadd.s32 4294967295, %s283_s9   ;;  %p257_p0 = scmp.ge.s32.totalorder %s283_s9, 1  ;;  %s283_s9 = sphi %s301_s9, %s12_s9  }
   0x2   : > { %p120_p1 = scmp.lt.s32.totalorder %s283_s9, 3 }
   0x4   : > { %p121_p2 = pnand %p257_p0, %p120_p1 }
   0x5   : > { %p143_p3 = scmp.lt.s32.totalorder (!%p121_p2), %s307_s10, 1  ;;  %v285_v0 = vmov (!%p121_p2), 0   ;;  %v165_v6 = vlaneseq (!%p121_p2)  ;;  %s260_s19 = sshll.u32 (!%p121_p2), %s307_s10, 3  ;;  %vm184_vm4 = vcmask (!%p121_p2), 7168   ;;  %vm192_vm5 = vcmask (!%p121_p2), 0  }
   0x6   : > { %124 = sbr.rel (%p121_p2) target bundleno = 347 (0x15b), region = 28  ;;  %272 = vset.pattern.permute.xlu0 (!%p121_p2), %v285_v0  ;;  %v178_v12 = vstv (!%p121_p2), %s260_s19 }
   0x7   : > { %v166_v7 = vand.u32 (!%p121_p2), 127, %v165_v6  ;;  %v177_v11 = vshrl.u32 (!%p121_p2), %v165_v6, 7 }
   0x9   : > { %v179_v13 = vadd.s32 (!%p121_p2), %v178_v12, %v177_v11 }
   0xb   : > { %vm180_vm2 = vcmp.lt.s32.totalorder (!%p121_p2), %v179_v13, 16 }
   0xd   : > { %s313_s11 = scalar_select %p143_p3, %s307_s10, 1 }
   0xf   : > { %s258_s12 = sshll.u32 %s313_s11, 3  ;;  %s153_s22 = scalar_lea.vmem %s332_s2, %s313_s11 }
  0x10   : > { %s146_s15 = scalar_lea.vmem %s330_s0, %s258_s12  ;;  %s150_s18 = scalar_lea.vmem %s331_s1, %s258_s12 }
  0x11   : > { %v154_v1 = vld [vmem:[%s146_s15] sm:$0xff] }
  0x12   : > { %155 = vmax.xlane.f32.xlu0 %v154_v1  ;;  %v164_v2 = vld [vmem:[%s150_s18] sm:$0xff] }
  0x13   : > { %vm181_vm1 = vcmp.ne.s32.totalorder %v164_v2, 4294967196 }
  0x14   : > { %vm182_vm3 = vmand %vm180_vm2, %vm181_vm1 }
  0x28   : > { %168 = vperm.xlu0 %272, %v164_v2  }
  0x9f   : > { %v156_v3 = vpop.xlane.xlu0 %155 }
  0xa0   : > { %v157_v4 = vsub.f32 %v154_v1, %v156_v3 }
  0xa2   : > { %v158_v5 = vmul.f32 1.442695, %v157_v4 }
  0xa4   : > { %273 = vpow2.f32 %v158_v5 }
  0xa7   : > { %v169_v8 = vpop.permute.xlu0 %168 }
  0xa8   : > { %vm170_vm0 = vcmp.eq.s32.totalorder %v166_v7, %v169_v8 }
  0xa9   : > { %v171_v10 = vsel %vm170_vm0, %v157_v4, 0.0 }
  0xae   : > { %v274_v9 = vpop.eup %273 }
  0xaf   : > { %160 = vadd.xlane.f32.xlu1 %v274_v9 }
  0xb3   : > { %172 = vadd.xlane.f32.xlu1 %v171_v10 }
 0x13c   : > { %v161_v14 = vpop.xlane.xlu1 %160 }
 0x13d   : > { %275 = vlog2.f32 %v161_v14 }
 0x140   : > { %v173_v17 = vpop.xlane.xlu1 %172 }
 0x147   : > { %v276_v15 = vpop.eup %275 }
 0x148   : > { %v163_v16 = vmul.f32 0.6931472, %v276_v15 }
 0x14a   : > { %v174_v18 = vsub.f32 %v163_v16, %v173_v17 }
 0x14c   : > { %v183_v19 = vsel %vm182_vm3, %v174_v18, 0.0 }
 0x14d   : > { %v185_v20 = vsel %vm184_vm4, %v183_v19, 0.0 }
 0x14e   : > { %v186_v21 = vrot.slane %v185_v20, 4 }
 0x150   : > { %v187_v22 = vadd.f32 %v186_v21, %v185_v20 }
 0x152   : > { %v188_v23 = vrot.slane %v187_v22, 2 }
 0x154   : > { %v189_v24 = vadd.f32 %v188_v23, %v187_v22 }
 0x156   : > { %v190_v25 = vrot.slane %v189_v24, 1 }
 0x158   : > { %v191_v26 = vadd.f32 %v190_v25, %v189_v24 }
 0x15a   : > { %193 = vst.msk [vmem:[%s153_s22] sm:$0x1] %vm192_vm5, %v191_v26 }
 0x15b PF: > { %s12_s9 = sadd.s32 1, %s283_s9  }
 0x15c   : > { %p9_p4 = scmp.ge.s32.totalorder %s12_s9, 4  }
 0x15e   :  { %11 = sbr.rel (!%p9_p4) target bundleno = 1 (0x1), region = 61 }

</bundles_post_ra>
